<compile_context>
chip_gen: v5e
topology: v5e:2x2
jax: 0.10.0
libtpu: 0.0.40
codegen_flags: <defaults>
</compile_context>

<pallas_src>
import functools
from typing import NamedTuple

import numpy as np

import jax
import jax.numpy as jnp
from jax.experimental import pallas as pl
from jax.experimental.pallas import tpu as pltpu


# ----------------------------------------------------------------------------
# helpers
# ----------------------------------------------------------------------------
def _round_up(v, m):
    return ((v + m - 1) // m) * m


def _cdiv(a, b):
    return (a + b - 1) // b


def _vmem_capacity_bytes():
    """Physical per-core VMEM; conservative 64 MiB (v7x) fallback."""
    try:
        info = pltpu.get_tpu_info()
        for name in ("vmem_capacity_bytes", "vmem_size_bytes", "vmem_bytes"):
            val = getattr(info, name, None)
            if val:
                return int(val)
    except Exception:
        pass
    return 64 * 1024 * 1024


def _choose_tiles(n_rows, n_red, n_feat, in_itemsize, out_itemsize, budget):
    """Pick (tm, tn, tk) against a per-generation VMEM budget.

    Priorities: tn == H (adjacency not re-streamed across feature blocks),
    tk == K (reduction grid axis collapses; adjacency + x streamed once),
    tm grows with graph size (less x re-streaming when K does not fit).
    """
    hp0 = _round_up(n_feat, 128)
    kp0 = _round_up(n_red, 128)
    np0 = _round_up(n_rows, 128)

    # tn: whole feature width when modest; otherwise rebalanced multiple of 128.
    tn = min(hp0, 512)
    nj = _cdiv(hp0, tn)
    tn = _round_up(_cdiv(hp0, nj), 128)

    # tm: keep >=2 row blocks for small graphs (both v7x TensorCores get work),
    # larger tiles for big graphs to cut x re-streaming across row blocks.
    if np0 <= 256:
        tm = 128
    elif np0 <= 1024:
        tm = 256
    else:
        tm = 512
    tm = min(tm, np0)

    # tk: grow the reduction tile toward the budget (tk == K is the win).
    fixed = 2 * tm * tn * out_itemsize + tm * tn * 4          # out dbl-buf + f32 acc
    per_k = 2 * (tm + tn) * in_itemsize                       # adj + x dbl-buf per K row
    avail = max(budget - fixed, 128 * per_k)
    tk = max(128, (avail // per_k) // 128 * 128)
    tk = min(tk, kp0)
    nk = _cdiv(kp0, tk)
    tk = _round_up(_cdiv(kp0, nk), 128)                       # keep K padding small

    # Megacore: try to keep the number of "parallel" blocks even.
    nm = _cdiv(n_rows, tm)
    if nm * nj > 1 and (nm * nj) % 2 == 1 and tm > 128:
        tm //= 2

    return tm, tn, tk


# ----------------------------------------------------------------------------
# one-time adjacency preparation (pad + cast, outside the per-forward jit)
# ----------------------------------------------------------------------------
class _PreparedAdj(NamedTuple):
    data: jax.Array            # (n_rel, Np, Kp) padded, compute dtype
    n_rows: int
    n_red: int
    n_feat: int
    tm: int
    tn: int
    tk: int
    kp: int
    hp: int
    compute_dtype: object
    out_dtype: object
    vmem_limit: int


def prepare_adjacency(adjs, n_feat, out_dtype, *, adj_dtype=jnp.bfloat16):
    """Pad + cast the (static) adjacency stack once; the per-call kernel then
    only streams the one selected relation (no full-stack copies per call)."""
    n_rel, n_rows, n_red = adjs.shape
    compute_dtype = jnp.dtype(adj_dtype)
    out_dtype = jnp.dtype(out_dtype)

    vmem_cap = _vmem_capacity_bytes()
    budget = vmem_cap // 3
    tm, tn, tk = _choose_tiles(n_rows, n_red, n_feat,
                               compute_dtype.itemsize, out_dtype.itemsize,
                               budget)
    np_rows = _round_up(n_rows, tm)
    kp = _round_up(n_red, tk)
    hp = _round_up(n_feat, tn)

    a = adjs
    if a.dtype != compute_dtype:
        a = a.astype(compute_dtype)
    if np_rows != n_rows or kp != n_red:
        a = jnp.pad(a, ((0, 0), (0, np_rows - n_rows), (0, kp - n_red)))

    footprint = (2 * tm * tk * compute_dtype.itemsize      # adjacency tile, dbl-buf
                 + 2 * tk * tn * compute_dtype.itemsize    # feature tile, dbl-buf
                 + 2 * tm * tn * out_dtype.itemsize        # output tile, dbl-buf
                 + tm * tn * 4)                            # fp32 accumulator
    vmem_limit = int(footprint * 1.5) + (4 << 20)
    vmem_limit = max(vmem_limit, 16 << 20)
    vmem_limit = min(vmem_limit, int(vmem_cap * 0.75))

    return _PreparedAdj(a, n_rows, n_red, n_feat, tm, tn, tk, kp, hp,
                        compute_dtype, out_dtype, vmem_limit)


# ----------------------------------------------------------------------------
# kernel
# ----------------------------------------------------------------------------
def _spmm_kernel(idx_ref, a_ref, x_ref, o_ref, acc_ref):
    # idx_ref (scalar prefetch) is consumed by the index_maps to select the
    # adjacency matrix out of the stacked tensor; the body never touches it.
    del idx_ref
    k = pl.program_id(2)

    @pl.when(k == 0)
    def _():
        acc_ref[...] = jnp.zeros_like(acc_ref)

    # fp32 MXU accumulation in a VMEM scratch (k is the innermost grid axis).
    acc_ref[...] += jnp.dot(a_ref[...], x_ref[...],
                            preferred_element_type=jnp.float32)

    @pl.when(k == pl.num_programs(2) - 1)
    def _():
        o_ref[...] = acc_ref[...].astype(o_ref.dtype)


@functools.partial(
    jax.jit,
    static_argnames=("n_rows", "n_red", "n_feat", "tm", "tn", "tk", "kp",
                     "hp", "compute_dtype", "out_dtype", "vmem_limit"),
)
def _spmm_exec(adjs_p, idx, x, *, n_rows, n_red, n_feat, tm, tn, tk, kp, hp,
               compute_dtype, out_dtype, vmem_limit):
    # Per-call work on the small (K, H) feature matrix only.
    if x.dtype != compute_dtype:
        x = x.astype(compute_dtype)
    if kp != n_red or hp != n_feat:
        x = jnp.pad(x, ((0, kp - n_red), (0, hp - n_feat)))
    idx_arr = jnp.asarray(idx, jnp.int32).reshape((1,))

    np_rows = adjs_p.shape[1]
    grid = (np_rows // tm, hp // tn, kp // tk)

    return pl.pallas_call(
        _spmm_kernel,
        # Exact (N, H) output in the caller's dtype: partial edge blocks are
        # clipped on writeback, no wrapper-side slice / astype passes.
        out_shape=jax.ShapeDtypeStruct((n_rows, n_feat), out_dtype),
        grid_spec=pltpu.PrefetchScalarGridSpec(
            num_scalar_prefetch=1,
            grid=grid,
            in_specs=[
                # adjacency tile: relation `idx` selected straight out of the
                # stacked (pre-padded) tensor -- no XLA-level gather.
                pl.BlockSpec((None, tm, tk),
                             lambda i, j, k, idx_ref: (idx_ref[0], i, k)),
                # feature tile: block index independent of i, so with tk == Kp
                # the x strip stays resident in VMEM across all row blocks.
                pl.BlockSpec((tk, tn), lambda i, j, k, idx_ref: (k, j)),
            ],
            out_specs=pl.BlockSpec((tm, tn), lambda i, j, k, idx_ref: (i, j)),
            scratch_shapes=[pltpu.VMEM((tm, tn), jnp.float32)],
        ),
        compiler_params=pltpu.CompilerParams(
            dimension_semantics=("parallel", "parallel", "arbitrary"),
            vmem_limit_bytes=vmem_limit,
        ),
    )(idx_arr, adjs_p, x)


def _run_prepared(prep, idx, x):
    assert x.shape == (prep.n_red, prep.n_feat), "feature matrix shape mismatch"
    return _spmm_exec(
        prep.data, idx, x,
        n_rows=prep.n_rows, n_red=prep.n_red, n_feat=prep.n_feat,
        tm=prep.tm, tn=prep.tn, tk=prep.tk, kp=prep.kp, hp=prep.hp,
        compute_dtype=prep.compute_dtype, out_dtype=prep.out_dtype,
        vmem_limit=prep.vmem_limit)


def spmm_from_stack(adjs, idx, x, *, adj_dtype=jnp.bfloat16):
    """out = adjs[idx] @ x (convenience one-shot entry point)."""
    prep = prepare_adjacency(adjs, x.shape[-1], x.dtype, adj_dtype=adj_dtype)
    return _run_prepared(prep, idx, x)


class ConvPallas:
    """Mirrors AutoGNRModel Conv: forward(x, adjs, idx) = adjs[idx] @ x.

    The adjacency stack is padded/cast once and cached (it is static across
    layers / iterations); each forward only runs the Pallas spmm kernel.
    """

    def __init__(self, n_hid_in, n_hid_out, adj_dtype=jnp.bfloat16):
        self.n_hid_in = n_hid_in
        self.n_hid_out = n_hid_out          # (module holds no parameters)
        self.adj_dtype = adj_dtype
        self._prep = None
        self._prep_key = None

    def __call__(self, x, adjs, idx):
        key = (id(adjs), adjs.shape, str(adjs.dtype), x.shape[-1], str(x.dtype))
        if self._prep is None or self._prep_key != key:
            self._prep = prepare_adjacency(adjs, x.shape[-1], x.dtype,
                                           adj_dtype=self.adj_dtype)
            self._prep_key = key
        return _run_prepared(self._prep, idx, x)


# ----------------------------------------------------------------------------
# demo / self-test
# ----------------------------------------------------------------------------
def _make_normalized_adj(key, n_rel, n_nodes, density=0.05):
    """Deterministic random sparse(-ish) adjacency, row-normalized like GCN."""
    k1, _ = jax.random.split(key)
    mask = (jax.random.uniform(k1, (n_rel, n_nodes, n_nodes)) < density).astype(
        jnp.float32
    )
    eye = jnp.eye(n_nodes, dtype=jnp.float32)[None, :, :]
    a = mask + eye
    row_sum = jnp.sum(a, axis=-1, keepdims=True)
    return a / row_sum


def _ref_spmm(adjs, idx, x):
    a64 = np.asarray(adjs[idx], np.float64)
    x64 = np.asarray(x, np.float64)
    return (a64 @ x64).astype(np.float32)


if __name__ == "__main__":
    key = jax.random.PRNGKey(0)
    k_adj, k_x = jax.random.split(key)

    n_nodes = 256          # N
    n_hid = 128            # feature width
    n_rel = 3              # number of adjacency matrices in `adjs`

    adjs = _make_normalized_adj(k_adj, n_rel, n_nodes)          # (3, 256, 256)
    x = jax.random.normal(k_x, (n_nodes, n_hid), jnp.float32)   # (256, 128)

    # Default path: bf16 adjacency stream, fp32 accumulation, fp32 output.
    conv = ConvPallas(n_hid, n_hid)
    out1 = jax.block_until_ready(conv(x, adjs, 1))
    assert out1.shape == (n_nodes, n_hid) and out1.dtype == x.dtype
    assert jnp.allclose(out1, _ref_spmm(adjs, 1, x), atol=5e-2, rtol=5e-2)

    # Second call with a different relation reuses the cached prepared stack
    # (the idx gather happens inside the kernel via scalar prefetch).
    out0 = jax.block_until_ready(conv(x, adjs, 0))
    assert jnp.allclose(out0, _ref_spmm(adjs, 0, x), atol=5e-2, rtol=5e-2)

    # Exact fp32 path (matches torch.spmm fp32 numerics).
    conv_fp32 = ConvPallas(n_hid, n_hid, adj_dtype=jnp.float32)
    out_exact = jax.block_until_ready(conv_fp32(x, adjs, 2))
    assert jnp.allclose(out_exact, _ref_spmm(adjs, 2, x), atol=1e-4, rtol=1e-4)

    # Non-tile-aligned sizes exercise padding + partial-edge-block writeback.
    k3, k4 = jax.random.split(k_x)
    adjs2 = _make_normalized_adj(k3, 2, 200)                     # (2, 200, 200)
    x2 = jax.random.normal(k4, (200, 96), jnp.float32)           # (200, 96)
    out2 = jax.block_until_ready(
        spmm_from_stack(adjs2, 0, x2, adj_dtype=jnp.float32))
    assert out2.shape == (200, 96)
    assert jnp.allclose(out2, _ref_spmm(adjs2, 0, x2), atol=1e-4, rtol=1e-4)

    print("KERNEL_OK")
</pallas_src>

<mosaic_0001>
module attributes {stable_mosaic.version = 11 : i64} {
  func.func @_spmm_kernel(%arg0: i32, %arg1: i32, %arg2: i32, %arg3: memref<1xi32, #tpu.memory_space<smem>>, %arg4: memref<1x128x256xbf16, #tpu.memory_space<vmem>>, %arg5: memref<256x128xbf16, #tpu.memory_space<vmem>>, %arg6: memref<128x128xf32, #tpu.memory_space<vmem>>, %arg7: memref<128x128xf32, #tpu.memory_space<vmem>>) attributes {dimension_semantics = [#tpu.dimension_semantics<parallel>, #tpu.dimension_semantics<parallel>, #tpu.dimension_semantics<arbitrary>], iteration_bounds = array<i64: 2, 1, 1>, scalar_prefetch = 1 : i64, scratch_operands = 1 : i64, tpu.core_type = #tpu.core_type<tc>, window_params = [{transform_indices = @transform_0, window_bounds = array<i64: 1, 128, 256>}, {transform_indices = @transform_1, window_bounds = array<i64: 256, 128>}, {transform_indices = @transform_2, window_bounds = array<i64: 128, 128>}]} {
    %c0_i32 = arith.constant 0 : i32
    %0 = arith.cmpi eq, %arg2, %c0_i32 : i32
    %1 = arith.extui %0 : i1 to i32
    %c0_i32_0 = arith.constant 0 : i32
    %2 = arith.cmpi ne, %1, %c0_i32_0 : i32
    scf.if %2 {
      %cst_11 = arith.constant 0.000000e+00 : f32
      %13 = vector.broadcast %cst_11 : f32 to vector<128x128xf32>
      %c0_12 = arith.constant 0 : index
      %c0_13 = arith.constant 0 : index
      %14 = vector.load %arg7[%c0_12, %c0_13] : memref<128x128xf32, #tpu.memory_space<vmem>>, vector<128x128xf32>
      tpu.vector_store %arg7[%c0_12, %c0_13], %13 {strides = array<i32>} : memref<128x128xf32, #tpu.memory_space<vmem>>, vector<128x128xf32>,
    } else {
    }
    %c0 = arith.constant 0 : index
    %c0_1 = arith.constant 0 : index
    %3 = vector.load %arg7[%c0, %c0_1] : memref<128x128xf32, #tpu.memory_space<vmem>>, vector<128x128xf32>
    %c0_2 = arith.constant 0 : index
    %c0_3 = arith.constant 0 : index
    %c0_4 = arith.constant 0 : index
    %4 = vector.load %arg4[%c0_2, %c0_3, %c0_4] : memref<1x128x256xbf16, #tpu.memory_space<vmem>>, vector<1x128x256xbf16>
    %5 = vector.shape_cast %4 : vector<1x128x256xbf16> to vector<128x256xbf16>
    %c0_5 = arith.constant 0 : index
    %c0_6 = arith.constant 0 : index
    %6 = vector.load %arg5[%c0_5, %c0_6] : memref<256x128xbf16, #tpu.memory_space<vmem>>, vector<256x128xbf16>
    %cst = arith.constant dense<0.000000e+00> : vector<128x128xf32>
    %7 = tpu.matmul %5, %6, %cst {dimension_numbers = #tpu.dot_dimension_numbers<[1], [0], [0], [1], [0, 0, 1, 1], [], []>} : vector<128x256xbf16>, vector<256x128xbf16>, vector<128x128xf32> -> vector<128x128xf32>
    %8 = arith.addf %3, %7 : vector<128x128xf32>
    %c0_7 = arith.constant 0 : index
    %c0_8 = arith.constant 0 : index
    %9 = vector.load %arg7[%c0_7, %c0_8] : memref<128x128xf32, #tpu.memory_space<vmem>>, vector<128x128xf32>
    tpu.vector_store %arg7[%c0_7, %c0_8], %8 {strides = array<i32>} : memref<128x128xf32, #tpu.memory_space<vmem>>, vector<128x128xf32>,
    %c0_i32_9 = arith.constant 0 : i32
    %10 = arith.cmpi eq, %arg2, %c0_i32_9 : i32
    %11 = arith.extui %10 : i1 to i32
    %c0_i32_10 = arith.constant 0 : i32
    %12 = arith.cmpi ne, %11, %c0_i32_10 : i32
    scf.if %12 {
      %c0_11 = arith.constant 0 : index
      %c0_12 = arith.constant 0 : index
      %13 = vector.load %arg7[%c0_11, %c0_12] : memref<128x128xf32, #tpu.memory_space<vmem>>, vector<128x128xf32>
      %c0_13 = arith.constant 0 : index
      %c0_14 = arith.constant 0 : index
      %14 = vector.load %arg6[%c0_13, %c0_14] : memref<128x128xf32, #tpu.memory_space<vmem>>, vector<128x128xf32>
      tpu.vector_store %arg6[%c0_13, %c0_14], %13 {strides = array<i32>} : memref<128x128xf32, #tpu.memory_space<vmem>>, vector<128x128xf32>,
    } else {
    }
    return
  }
  func.func @transform_0(%arg0: i32, %arg1: i32, %arg2: i32, %arg3: memref<1xi32, #tpu.memory_space<smem>>) -> (i32, i32, i32) {
    %c0 = arith.constant 0 : index
    %0 = memref.load %arg3[%c0] : memref<1xi32, #tpu.memory_space<smem>>
    %c0_i32 = arith.constant 0 : i32
    return %0, %arg0, %arg2 : i32, i32, i32
  }
  func.func @transform_1(%arg0: i32, %arg1: i32, %arg2: i32, %arg3: memref<1xi32, #tpu.memory_space<smem>>) -> (i32, i32) {
    %c0_i32 = arith.constant 0 : i32
    return %arg2, %arg1 : i32, i32
  }
  func.func @transform_2(%arg0: i32, %arg1: i32, %arg2: i32, %arg3: memref<1xi32, #tpu.memory_space<smem>>) -> (i32, i32) {
    %c0_i32 = arith.constant 0 : i32
    return %arg0, %arg1 : i32, i32
  }
}

</mosaic_0001>

<bundles_post_ra>
// kernel: _spmm_exec.1
= control target key start
LH: loop header
LB: loop body
LE: loop exit
PB: predicated region body
PF: predicated region fallthrough
CT: control target
= control target key end

     0   :  { %s1507_s0 = inlined_call_operand.<no memory space> [shape: s32[1], index: 0, kind: input, shape index: {}]   ;;  %s1508_s1 = inlined_call_operand.hbm [shape: bf16[3,256,256], index: 1, kind: input, shape index: {}]   ;;  %s1509_s2 = inlined_call_operand.vmem [shape: bf16[256,128], index: 2, kind: input, shape index: {}]   ;;  %s1510_s3 = inlined_call_operand.hbm [shape: f32[256,128], index: 3, kind: output, shape index: {}]  }
   0x1   :  { %8 = sst [smem:[#allocation4]] %s1507_s0 }
   0x2   :  { %9 = vsyncpa [#allocation6], 0 }
   0x3   :  { %11 = vsyncpa [#allocation6 + $0x1], 0 }
   0x4   :  { %12 = vsyncpa [#allocation7], 0 }
   0x5   :  { %14 = vsyncpa [#allocation7 + $0x1], 0  ;;  %s1238_s14 = smov 0   ;;  %s1240_s15 = smov 0  }
   0x6   :  { %s1242_s16 = smov 0   ;;  %s1244_s17 = smov 0  }
   0x7   :  { %s1246_s18 = smov 0   ;;  %s1248_s19 = smov 0  }
   0x8   :  { %s1250_s20 = smov 0   ;;  %s1252_s21 = smov 0  }
   0x9   :  { %s1254_s0 = smov 0  }
   0xa LB: > { %s787_s22 = sadd.s32 4294967295, %s1209_s0   ;;  %s788_s23 = sadd.s32 4294967294, %s1209_s0   ;;  %s1209_s0 = sphi %s1254_s0, %s20_s0   ;;  %s1205_s21 = sphi %s1252_s21, %s1526_s21   ;;  %s1201_s20 = sphi %s1250_s20, %s1525_s20   ;;  %s1197_s19 = sphi %s1248_s19, %s1524_s19   ;;  %s1193_s18 = sphi %s1246_s18, %s1523_s18   ;;  %s1189_s17 = sphi %s1244_s17, %s1522_s17   ;;  %s1185_s16 = sphi %s1242_s16, %s1521_s16   ;;  %s1181_s15 = sphi %s1240_s15, %s1520_s15   ;;  %s1177_s14 = sphi %s1238_s14, %s1519_s14  }
   0xb   : > { %s39_s24 = sadd.s32 1, %s1205_s21  ;;  %s43_s25 = sld [smem:[#allocation4]] }
   0xc   : > { %p41_p0 = scmp.ge.s32.totalorder %s39_s24, 2  ;;  %s52_s26 = sadd.s32 1, %s1197_s19 }
   0xd   : > { %p59_p1 = scmp.ne.s32.totalorder %s1197_s19, %s1193_s18  ;;  %p60_p2 = scmp.eq.s32.totalorder %s1209_s0, 0 }
   0xe   : > { %s1528_s24 = smov (%p41_p0, %s39_s24), 0  ;;  %p65_p4 = scmp.ne.s32.totalorder %s1193_s18, %s1189_s17 }
   0xf   : > { %1512 = sst [smem:[#allocation11_spill]] %s1528_s24  ;;  %p1290_p3 = por %p60_p2, %p59_p1 }
  0x10   : > { %s46_s28 = ssub.s32 %s1205_s21, %s1528_s24  ;;  %p66_p5 = scmp.eq.s32.totalorder %s787_s22, 0 }
  0x11   : > { %p106_p6 = scmp.eq.s32.totalorder %s46_s28, 0  ;;  %s108_s30 = sadd.s32 1, %s1185_s16 }
  0x12   : > { %p1297_p7 = por %p66_p5, %p65_p4  ;;  %p118_p8 = scmp.ne.s32.totalorder %s1185_s16, %s1181_s15 }
  0x13   : > { %s1303_s4 = scalar_select %p106_p6, %s1185_s16, %s108_s30  }
  0x14   : > { %s1306_s5 = scalar_select %p106_p6, %s1197_s19, %s52_s26  }
  0x15   : > { %p119_p9 = scmp.eq.s32.totalorder %s787_s22, 1  ;;  %p124_p10 = scmp.ne.s32.totalorder %s1181_s15, %s1177_s14 }
  0x16   : > { %p125_p11 = scmp.eq.s32.totalorder %s788_s23, 1  ;;  %p791_p13 = scmp.ge.s32.totalorder %s1209_s0, 2 }
  0x17   : > { %p1312_p12 = por %p119_p9, %p118_p8  ;;  %p995_p1 = scmp.lt.s32.totalorder %s1209_s0, 2 }
  0x18   : > { %p1317_p0 = por %p125_p11, %p124_p10  ;;  %s157_s8 = sand.u32 1, %s1197_s19  }
  0x19   : > { %s933_s9 = sshll.u32 %s1205_s21, 5  ;;  %s792_s10 = sshll.u32 %s157_s8, 7 }
  0x1a   : > { %s795_s11 = sshll.u32 %s43_s25, 6  ;;  %s161_s13 = scalar_lea.vmem [#allocation5], %s792_s10 }
  0x1b   : > { %s170_s12 = sadd.s32 %s933_s9, %s795_s11  ;;  %s1324_s17 = sshll.u32 %s161_s13, 4  ;;  %s176_s17 = int_to_ptr.vmem [resolvable:$true] %s1324_s17 }
  0x1c   : > { %s796_s22 = sshll.u32 %s170_s12, 2  ;;  %p1332_p2 = pnand %p995_p1, %p1290_p3 }
  0x1d   : > { %s172_s28 = scalar_lea.hbm %s1508_s1, %s796_s22  ;;  %p797_p4 = scmp.ge.s32.totalorder %s1209_s0, 1 }
  0x1e   : > { %s173_s24 = sshll.u32 %s172_s28, 4  ;;  %s158_s25 = scalar_lea.sflag [#allocation6], %s157_s8  ;;  %s174_s24 = int_to_ptr.hbm [resolvable:$true] %s173_s24 }
  0x1f   : > { %s1073_s9 = sshra.s32 %s174_s24, 4  ;;  %p1077_p6 = pneg %p1332_p2  ;;  %s1074_s9 = int_to_ptr.hbm [resolvable:$true] %s1073_s9 }
  0x20   : > { %s1075_s10 = scalar_lea.hbm %s1074_s9, 128  ;;  %s1080_s27 = scalar_lea.hbm %s1508_s1, 768 }
  0x21   : > { %p1076_p5 = scmp.ne.s32.totalorder %s1074_s9, %s1075_s10  ;;  %p1081_p3 = scmp.lt.s32.totalorder %s1074_s9, %s1508_s1 }
  0x22   : > { %p1082_p10 = scmp.lt.s32.totalorder %s1080_s27, %s1075_s10 }
  0x23   : > { %p1078_p8 = pnand %p1077_p6, %p1076_p5 }
  0x24   : > { %p1083_p11 = por %p1082_p10, %p1081_p3 }
  0x25   : > { %p1079_p9 = pneg %p1078_p8 }
  0x27   : > { %p1084_p1 = pnand %p1083_p11, %p1079_p9 }
  0x29   : > { %1087 = shalt.err (!%p1084_p1)
}
  0x2a   : > { %s1211_s8 = smov 128   ;;  %s1212_s23 = smov 8  }
  0x2b   : > { %990 = dma.hbm_to_vmem [thread:$0]  (!%p1332_p2), %s174_s24, 2048, %s176_s17, %s158_s25, %s1211_s8, %s1211_s8, %s1212_s23  }
  0x2c   : > { %p183_p5 = scmp.lt.s32.totalorder %s1209_s0, 3 }
  0x2e   : > { %p184_p6 = pnand %p797_p4, %p183_p5 }
  0x2f   : > { %s189_s26 = sand.u32 (!%p184_p6), 1, %s1193_s18  }
  0x30   : > { %187 = sbr.rel (%p184_p6) target bundleno = 281 (0x119), region = 28  ;;  %s798_s28 = sshll.u32 (!%p184_p6), %s189_s26, 7 }
  0x31   : > { %s190_s9 = scalar_lea.sflag (!%p184_p6), [#allocation6], %s189_s26  ;;  %s1351_s10 = scalar_lea.vmem (!%p184_p6), [#allocation5], %s798_s28 }
  0x35   : > { %1168 = dma.done.wait (%p1297_p7), %s190_s9, 2048  }
  0x36   : > { %1170 = vsyncadd (%p1297_p7), %s190_s9, 4294965248  ;;  %v957_v0 = vld [vmem:[%s1509_s2 + $0x38] sm:$0xff]  ;;  %v956_v2 = vld [vmem:[%s1509_s2 + $0x30] sm:$0xff]  ;;  %s220_s24 = sand.u32 1, %s1181_s15   ;;  %s1123_s9 = scalar_lea.hbm %s1510_s3, 256 }
  0x37   : > { %v965_v1 = vld [vmem:[%s1509_s2 + $0x78] sm:$0xff]  ;;  %496 = vmatpush.bf16.msra.mxu0 %v957_v0  ;;  %967 = vmatpush.bf16.msra.mxu2 %v957_v0  ;;  %v964_v3 = vld [vmem:[%s1509_s2 + $0x70] sm:$0xff]  ;;  %v955_v4 = vld [vmem:[%s1509_s2 + $0x28] sm:$0xff]  ;;  %s799_s17 = sshll.u32 %s220_s24, 7 }
  0x38   : > { %545 = vmatpush.bf16.msra.mxu1 %v965_v1  ;;  %975 = vmatpush.bf16.msra.mxu3 %v965_v1  ;;  %v963_v5 = vld [vmem:[%s1509_s2 + $0x68] sm:$0xff]  ;;  %v954_v6 = vld [vmem:[%s1509_s2 + $0x20] sm:$0xff]  ;;  %v953_v8 = vld [vmem:[%s1509_s2 + $0x18] sm:$0xff]  ;;  %s1440_s30 = scalar_lea.vmem [#allocation8], %s799_s17 }
  0x39   : > { %v962_v7 = vld [vmem:[%s1509_s2 + $0x60] sm:$0xff]  ;;  %v961_v9 = vld [vmem:[%s1509_s2 + $0x58] sm:$0xff]  ;;  %v952_v10 = vld [vmem:[%s1509_s2 + $0x10] sm:$0xff]  ;;  %s675_s29 = sshll.u32 %s1440_s30, 4  ;;  %s676_s29 = int_to_ptr.vmem [resolvable:$true] %s675_s29 }
  0x3a   : > { %v960_v11 = vld [vmem:[%s1509_s2 + $0x50] sm:$0xff]  ;;  %v951_v12 = vld [vmem:[%s1509_s2 + $0x8] sm:$0xff]  ;;  %v950_v14 = vld [vmem:[%s1509_s2] sm:$0xff] }
  0x3b   : > { %497 = vmatpush.bf16.msra.mxu0 %v956_v2  ;;  %968 = vmatpush.bf16.msra.mxu2 %v956_v2  ;;  %v959_v13 = vld [vmem:[%s1509_s2 + $0x48] sm:$0xff]  ;;  %v958_v15 = vld [vmem:[%s1509_s2 + $0x40] sm:$0xff]  ;;  %v810_v28 = vld [vmem:[%s1351_s10 + $0x10] sm:$0xf] }
  0x3c   : > { %546 = vmatpush.bf16.msra.mxu1 %v964_v3  ;;  %976 = vmatpush.bf16.msra.mxu3 %v964_v3  ;;  %v802_v16 = vld [vmem:[%s1351_s10] sm:$0xf]  ;;  %v935_v17 = vld [vmem:[%s1351_s10 + $0x4] sm:$0xf0]  ;;  %v934_v20 = vld [vmem:[%s1351_s10 + $0x4] sm:$0xf] }
  0x3d   : > { %v834_v18 = vld [vmem:[%s1351_s10 + $0x40] sm:$0xf]  ;;  %v943_v19 = vld [vmem:[%s1351_s10 + $0x44] sm:$0xf0]  ;;  %v804_v21 = vld [vmem:[%s1351_s10 + $0x8] sm:$0xf0]  ;;  %v803_v24 = vor.u32 %v935_v17, %v802_v16 }
  0x3e   : > { %v942_v22 = vld [vmem:[%s1351_s10 + $0x44] sm:$0xf]  ;;  %v836_v23 = vld [vmem:[%s1351_s10 + $0x48] sm:$0xf0]  ;;  %v835_v25 = vor.u32 %v943_v19, %v834_v18  ;;  %v807_v26 = vor.u32 %v934_v20, %v804_v21  ;;  %v937_v29 = vld [vmem:[%s1351_s10 + $0x14] sm:$0xf0] }
  0x3f   : > { %498 = vmatpush.bf16.msra.mxu0 %v955_v4  ;;  %969 = vmatpush.bf16.msra.mxu2 %v955_v4  ;;  %v839_v27 = vor.u32 %v942_v22, %v836_v23  ;;  %v842_v30 = vld [vmem:[%s1351_s10 + $0x50] sm:$0xf]  ;;  %v945_v31 = vld [vmem:[%s1351_s10 + $0x54] sm:$0xf0]  ;;  %v936_v32 = vld [vmem:[%s1351_s10 + $0x14] sm:$0xf]  ;;  %v811_v36 = vor.u32 %v937_v29, %v810_v28 }
  0x40   : > { %547 = vmatpush.bf16.msra.mxu1 %v963_v5  ;;  %977 = vmatpush.bf16.msra.mxu3 %v963_v5  ;;  %v812_v33 = vld [vmem:[%s1351_s10 + $0x18] sm:$0xf0]  ;;  %v944_v34 = vld [vmem:[%s1351_s10 + $0x54] sm:$0xf]  ;;  %v843_v37 = vor.u32 %v945_v31, %v842_v30  ;;  %v818_v40 = vld [vmem:[%s1351_s10 + $0x20] sm:$0xf] }
  0x41   : > { %v844_v35 = vld [vmem:[%s1351_s10 + $0x58] sm:$0xf0]  ;;  %v815_v38 = vor.u32 %v936_v32, %v812_v33  ;;  %v939_v41 = vld [vmem:[%s1351_s10 + $0x24] sm:$0xf0]  ;;  %v850_v42 = vld [vmem:[%s1351_s10 + $0x60] sm:$0xf] }
  0x42   : > { %v847_v39 = vor.u32 %v944_v34, %v844_v35  ;;  %v947_v43 = vld [vmem:[%s1351_s10 + $0x64] sm:$0xf0]  ;;  %v938_v44 = vld [vmem:[%s1351_s10 + $0x24] sm:$0xf]  ;;  %v820_v45 = vld [vmem:[%s1351_s10 + $0x28] sm:$0xf0]  ;;  %v819_v48 = vor.u32 %v939_v41, %v818_v40 }
  0x43   : > { %499 = vmatpush.bf16.msra.mxu0 %v954_v6  ;;  %970 = vmatpush.bf16.msra.mxu2 %v954_v6  ;;  %v946_v46 = vld [vmem:[%s1351_s10 + $0x64] sm:$0xf]  ;;  %v852_v47 = vld [vmem:[%s1351_s10 + $0x68] sm:$0xf0]  ;;  %v851_v49 = vor.u32 %v947_v43, %v850_v42  ;;  %v823_v50 = vor.u32 %v938_v44, %v820_v45  ;;  %v826_v52 = vld [vmem:[%s1351_s10 + $0x30] sm:$0xf] }
  0x44   : > { %548 = vmatpush.bf16.msra.mxu1 %v962_v7  ;;  %978 = vmatpush.bf16.msra.mxu3 %v962_v7  ;;  %v855_v51 = vor.u32 %v946_v46, %v852_v47  ;;  %v941_v53 = vld [vmem:[%s1351_s10 + $0x34] sm:$0xf0]  ;;  %v858_v54 = vld [vmem:[%s1351_s10 + $0x70] sm:$0xf]  ;;  %v940_v56 = vld [vmem:[%s1351_s10 + $0x34] sm:$0xf] }
  0x45   : > { %v949_v55 = vld [vmem:[%s1351_s10 + $0x74] sm:$0xf0]  ;;  %v828_v57 = vld [vmem:[%s1351_s10 + $0x38] sm:$0xf0]  ;;  %v948_v58 = vld [vmem:[%s1351_s10 + $0x74] sm:$0xf]  ;;  %v827_v60 = vor.u32 %v941_v53, %v826_v52 }
  0x46   : > { %v860_v59 = vld [vmem:[%s1351_s10 + $0x78] sm:$0xf0]  ;;  %v859_v61 = vor.u32 %v949_v55, %v858_v54  ;;  %v831_v62 = vor.u32 %v940_v56, %v828_v57  ;;  %s966_s10 = sshll.u32 %s1201_s20, 7  ;;  %s662_s20 = scalar_lea.sflag [#allocation7], %s220_s24 }
  0x47   : > { %500 = vmatpush.bf16.msra.mxu0 %v953_v8  ;;  %971 = vmatpush.bf16.msra.mxu2 %v953_v8  ;;  %v863_v63 = vor.u32 %v948_v58, %v860_v59  ;;  %s674_s13 = scalar_lea.hbm %s1510_s3, %s966_s10 }
  0x48   : > { %549 = vmatpush.bf16.msra.mxu1 %v961_v9  ;;  %979 = vmatpush.bf16.msra.mxu3 %v961_v9  ;;  %s677_s22 = sshll.u32 %s674_s13, 4  ;;  %s678_s22 = int_to_ptr.hbm [resolvable:$true] %s677_s22 }
  0x49   : > { %s1117_s8 = sshra.s32 %s678_s22, 4  ;;  %s1118_s8 = int_to_ptr.hbm [resolvable:$true] %s1117_s8 }
  0x4a   : > { %s1119_s23 = scalar_lea.hbm %s1118_s8, 128  ;;  %p1124_p8 = scmp.lt.s32.totalorder %s1118_s8, %s1510_s3 }
  0x4b   : > { %501 = vmatpush.bf16.msra.mxu0 %v952_v10  ;;  %972 = vmatpush.bf16.msra.mxu2 %v952_v10  ;;  %p1120_p7 = scmp.ne.s32.totalorder %s1118_s8, %s1119_s23  ;;  %p1125_p9 = scmp.lt.s32.totalorder %s1123_s9, %s1119_s23 }
  0x4c   : > { %550 = vmatpush.bf16.msra.mxu1 %v960_v11  ;;  %980 = vmatpush.bf16.msra.mxu3 %v960_v11 }
  0x4d   : > { %p1121_p2 = pnand %p1120_p7, %p1312_p12  ;;  %p1126_p3 = por %p1125_p9, %p1124_p8 }
  0x4f   : > { %502 = vmatpush.bf16.msra.mxu0 %v951_v12  ;;  %973 = vmatpush.bf16.msra.mxu2 %v951_v12  ;;  %p1122_p4 = pneg %p1121_p2 }
  0x50   : > { %551 = vmatpush.bf16.msra.mxu1 %v959_v13  ;;  %981 = vmatpush.bf16.msra.mxu3 %v959_v13 }
  0x51   : > { %p1127_p10 = pnand %p1126_p3, %p1122_p4 }
  0x53   : > { %503 = vmatpush.bf16.msra.mxu0 %v950_v14  ;;  %974 = vmatpush.bf16.msra.mxu2 %v950_v14 }
  0x54   : > { %552 = vmatpush.bf16.msra.mxu1 %v958_v15  ;;  %982 = vmatpush.bf16.msra.mxu3 %v958_v15 }
  0x56   : > { %504 = vmatmul.bf16.vlgmr.msra.gmra.mxu0 %v803_v24  ;;  %524 = vmatmul.bf16.vlgmr.msra.gmra.mxu2 %v835_v25 }
  0x57   : > { %553 = vmatmul.bf16.vlgmr.msra.gmra.mxu1 %v807_v26  ;;  %573 = vmatmul.bf16.vlgmr.msra.gmra.mxu3 %v839_v27 }
  0x66   : > { %509 = vmatmul.bf16.gmra.mxu0 %v811_v36  ;;  %529 = vmatmul.bf16.gmra.mxu2 %v843_v37 }
  0x67   : > { %558 = vmatmul.bf16.gmra.mxu1 %v815_v38  ;;  %578 = vmatmul.bf16.gmra.mxu3 %v847_v39 }
  0x76   : > { %514 = vmatmul.bf16.gmra.mxu0 %v819_v48  ;;  %534 = vmatmul.bf16.gmra.mxu2 %v851_v49 }
  0x77   : > { %563 = vmatmul.bf16.gmra.mxu1 %v823_v50  ;;  %583 = vmatmul.bf16.gmra.mxu3 %v855_v51 }
  0x86   : > { %519 = vmatmul.bf16.gmra.mxu0 %v827_v60  ;;  %539 = vmatmul.bf16.gmra.mxu2 %v859_v61 }
  0x87   : > { %568 = vmatmul.bf16.gmra.mxu1 %v831_v62  ;;  %588 = vmatmul.bf16.gmra.mxu3 %v863_v63 }
  0xd3   : > { %v505_v0 = vpop.f32.mrf.mxu0 }
  0xd4   : > { %v554_v1 = vpop.f32.mrf.mxu1 }
  0xd5   : > { %v555_v2 = vadd.f32 %v554_v1, %v505_v0 }
  0xd7   : > { %645 = vst [vmem:[%s1440_s30] sm:$0xff] %v555_v2 }
  0xd9   : > { %v525_v3 = vpop.f32.mrf.mxu2 }
  0xda   : > { %v574_v4 = vpop.f32.mrf.mxu3 }
  0xdb   : > { %v575_v5 = vadd.f32 %v574_v4, %v525_v3  ;;  %v507_v6 = vpop.f32.mrf.mxu0 }
  0xdc   : > { %v556_v7 = vpop.f32.mrf.mxu1 }
  0xdd   : > { %653 = vst [vmem:[%s1440_s30 + $0x40] sm:$0xff] %v575_v5  ;;  %v557_v8 = vadd.f32 %v556_v7, %v507_v6 }
  0xdf   : > { %646 = vst [vmem:[%s1440_s30 + $0x8] sm:$0xff] %v557_v8 }
  0xe1   : > { %v527_v9 = vpop.f32.mrf.mxu2 }
  0xe2   : > { %v576_v10 = vpop.f32.mrf.mxu3 }
  0xe3   : > { %v577_v11 = vadd.f32 %v576_v10, %v527_v9  ;;  %v510_v12 = vpop.f32.mrf.mxu0 }
  0xe4   : > { %v559_v13 = vpop.f32.mrf.mxu1 }
  0xe5   : > { %654 = vst [vmem:[%s1440_s30 + $0x48] sm:$0xff] %v577_v11  ;;  %v560_v14 = vadd.f32 %v559_v13, %v510_v12 }
  0xe7   : > { %647 = vst [vmem:[%s1440_s30 + $0x10] sm:$0xff] %v560_v14 }
  0xe9   : > { %v530_v15 = vpop.f32.mrf.mxu2 }
  0xea   : > { %v579_v16 = vpop.f32.mrf.mxu3 }
  0xeb   : > { %v580_v17 = vadd.f32 %v579_v16, %v530_v15  ;;  %v512_v18 = vpop.f32.mrf.mxu0 }
  0xec   : > { %v561_v19 = vpop.f32.mrf.mxu1 }
  0xed   : > { %655 = vst [vmem:[%s1440_s30 + $0x50] sm:$0xff] %v580_v17  ;;  %v562_v20 = vadd.f32 %v561_v19, %v512_v18 }
  0xef   : > { %648 = vst [vmem:[%s1440_s30 + $0x18] sm:$0xff] %v562_v20 }
  0xf1   : > { %v532_v21 = vpop.f32.mrf.mxu2 }
  0xf2   : > { %v581_v22 = vpop.f32.mrf.mxu3 }
  0xf3   : > { %v582_v23 = vadd.f32 %v581_v22, %v532_v21  ;;  %v515_v24 = vpop.f32.mrf.mxu0 }
  0xf4   : > { %v564_v25 = vpop.f32.mrf.mxu1 }
  0xf5   : > { %656 = vst [vmem:[%s1440_s30 + $0x58] sm:$0xff] %v582_v23  ;;  %v565_v26 = vadd.f32 %v564_v25, %v515_v24 }
  0xf7   : > { %649 = vst [vmem:[%s1440_s30 + $0x20] sm:$0xff] %v565_v26 }
  0xf9   : > { %v535_v27 = vpop.f32.mrf.mxu2 }
  0xfa   : > { %v584_v28 = vpop.f32.mrf.mxu3 }
  0xfb   : > { %v585_v29 = vadd.f32 %v584_v28, %v535_v27  ;;  %v517_v30 = vpop.f32.mrf.mxu0 }
  0xfc   : > { %v566_v31 = vpop.f32.mrf.mxu1 }
  0xfd   : > { %657 = vst [vmem:[%s1440_s30 + $0x60] sm:$0xff] %v585_v29  ;;  %v567_v32 = vadd.f32 %v566_v31, %v517_v30 }
  0xff   : > { %650 = vst [vmem:[%s1440_s30 + $0x28] sm:$0xff] %v567_v32 }
 0x101   : > { %v537_v33 = vpop.f32.mrf.mxu2 }
 0x102   : > { %v586_v34 = vpop.f32.mrf.mxu3 }
 0x103   : > { %v587_v35 = vadd.f32 %v586_v34, %v537_v33  ;;  %v520_v36 = vpop.f32.mrf.mxu0 }
 0x104   : > { %v569_v37 = vpop.f32.mrf.mxu1 }
 0x105   : > { %658 = vst [vmem:[%s1440_s30 + $0x68] sm:$0xff] %v587_v35  ;;  %v570_v38 = vadd.f32 %v569_v37, %v520_v36 }
 0x107   : > { %651 = vst [vmem:[%s1440_s30 + $0x30] sm:$0xff] %v570_v38 }
 0x109   : > { %v540_v39 = vpop.f32.mrf.mxu2 }
 0x10a   : > { %v589_v40 = vpop.f32.mrf.mxu3 }
 0x10b   : > { %v590_v41 = vadd.f32 %v589_v40, %v540_v39  ;;  %v522_v42 = vpop.f32.mrf.mxu0 }
 0x10c   : > { %v571_v43 = vpop.f32.mrf.mxu1 }
 0x10d   : > { %659 = vst [vmem:[%s1440_s30 + $0x70] sm:$0xff] %v590_v41  ;;  %v572_v44 = vadd.f32 %v571_v43, %v522_v42 }
 0x10f   : > { %652 = vst [vmem:[%s1440_s30 + $0x38] sm:$0xff] %v572_v44 }
 0x111   : > { %v542_v45 = vpop.f32.mrf.mxu2 }
 0x112   : > { %v591_v46 = vpop.f32.mrf.mxu3 }
 0x113   : > { %v592_v47 = vadd.f32 %v591_v46, %v542_v45 }
 0x115   : > { %660 = vst [vmem:[%s1440_s30 + $0x78] sm:$0xff] %v592_v47 }
 0x116   : > { %1130 = shalt.err (!%p1127_p10)
}
 0x117   : > { %s1213_s24 = smov 128   ;;  %s1214_s17 = smov 8  }
 0x118   : > { %985 = dma.vmem_to_hbm [thread:$0]  (%p1312_p12), %s676_s29, 2048, %s678_s22, %s662_s20, %s1213_s24, %s1213_s24, %s1214_s17  }
 0x119 PF: > { %s692_s30 = sand.u32 1, %s1177_s14   ;;  %p992_p11 = pnand %p791_p13, %p1317_p0 }
 0x11a   : > { %s693_s10 = scalar_lea.sflag [#allocation7], %s692_s30 }
 0x11b   : > { %p993_p1 = pneg %p992_p11 }
 0x11d   : > { %1172 = dma.done.wait (%p993_p1), %s693_s10, 2048  }
 0x11e   : > { %1174 = vsyncadd (%p993_p1), %s693_s10, 4294965248  ;;  %s20_s0 = sadd.s32 1, %s1209_s0   ;;  %s1518_s6 = sld [smem:[#allocation11_spill]] }
 0x11f   : > { %p17_p5 = scmp.ge.s32.totalorder %s20_s0, 4   ;;  %s1519_s14 = smov %s1181_s15 }
 0x120   : > { %s1520_s15 = smov %s1185_s16  ;;  %s1521_s16 = smov %s1303_s4 }
 0x121   : > { %s1522_s17 = smov %s1193_s18  ;;  %s1523_s18 = smov %s1197_s19 }
 0x122   : > { %s1524_s19 = smov %s1306_s5  ;;  %s1525_s20 = smov %s1205_s21 }
 0x123   :  { %19 = sbr.rel (!%p17_p5) target bundleno = 10 (0xa), region = 84 }
 0x124   : > { %s1526_s21 = smov %s1518_s6 }
 0x128   :  { %699 = vsyncpa [#allocation6], 1 }
 0x129   :  { %701 = vsyncpa [#allocation6 + $0x1], 1 }
 0x12a   :  { %702 = vsyncpa [#allocation7], 1 }
 0x12b   :  { %704 = vsyncpa [#allocation7 + $0x1], 1 }

</bundles_post_ra>
